<compile_context>
chip_gen: v6e
topology: v6e:2x2x1
jax: 0.10.0
libtpu: 0.0.40
codegen_flags: <defaults>
</compile_context>

<pallas_src>
import jax
import jax.numpy as jnp
import numpy as np
from jax import lax
from jax.experimental import pallas as pl
from jax.experimental.pallas import tpu as pltpu


def _bpr_kernel(uidx_ref, iidx_ref,   # scalar-prefetch index vectors (SMEM)
                u_hbm, i_hbm,         # full embedding tables (HBM, pl.ANY)
                out_ref,              # (TB, 1) per-tile predictions (VMEM)
                u_buf, i_buf,         # (TB, D) gather scratch (VMEM)
                sem):                 # DMA semaphores, shape (2,)
    t = pl.program_id(0)
    tb = u_buf.shape[0]
    base = t * tb

    # Phase 1: put all 2*TB row-gather DMAs in flight (latency overlapped
    # across the whole tile; the DMA queue back-pressures if it fills).
    def _issue(r, carry):
        u_row = uidx_ref[base + r]
        i_row = iidx_ref[base + r]
        pltpu.make_async_copy(u_hbm.at[pl.ds(u_row, 1)],
                              u_buf.at[pl.ds(r, 1)], sem.at[0]).start()
        pltpu.make_async_copy(i_hbm.at[pl.ds(i_row, 1)],
                              i_buf.at[pl.ds(r, 1)], sem.at[1]).start()
        return carry

    lax.fori_loop(0, tb, _issue, 0)

    # Phase 2: drain — one wait per issued copy (the wait only needs the
    # semaphore + transfer size, so a dummy src index is fine).
    def _drain(r, carry):
        pltpu.make_async_copy(u_hbm.at[pl.ds(0, 1)],
                              u_buf.at[pl.ds(r, 1)], sem.at[0]).wait()
        pltpu.make_async_copy(i_hbm.at[pl.ds(0, 1)],
                              i_buf.at[pl.ds(r, 1)], sem.at[1]).wait()
        return carry

    lax.fori_loop(0, tb, _drain, 0)

    # Phase 3: vectorized per-tile dot products (f32 accumulation even when
    # the tables are bf16 — v5e has no bf16 VALU).
    dots = jnp.sum(u_buf[...].astype(jnp.float32) * i_buf[...].astype(jnp.float32),
                   axis=1, keepdims=True)              # (TB, 1)
    out_ref[...] = dots.astype(out_ref.dtype)


def _round_up(x, m):
    return ((x + m - 1) // m) * m


def bpr_forward(user_idx, item_idx, user_emb, item_emb, *, tile_b=256):
    """Pallas TPU implementation of BPR.forward."""
    B = int(user_idx.shape[0])
    NU, D = user_emb.shape
    NI, D2 = item_emb.shape
    assert D == D2
    out_dtype = user_emb.dtype
    itemsize = jnp.dtype(user_emb.dtype).itemsize

    # TODO(synk): PyTorch nn.Embedding raises on out-of-range indices; here we
    # clamp so a bad index can never issue an out-of-bounds row DMA.
    uidx = jnp.clip(user_idx.astype(jnp.int32), 0, NU - 1)
    iidx = jnp.clip(item_idx.astype(jnp.int32), 0, NI - 1)

    # ---- Tile sizing -------------------------------------------------------
    # TB rows per grid step; multiple of 8 (sublane-aligned scratch rows).
    bytes_per_row = 2 * D * itemsize
    vmem_rows = max(8, ((4 * 1024 * 1024) // bytes_per_row) // 8 * 8)   # ~4 MiB cap
    TB = max(8, min(_round_up(tile_b, 8), _round_up(B, 8), vmem_rows))
    # Prefer >= 2 tiles so the "parallel" axis can span v7x's 2 TensorCores.
    if B >= 16 and pl.cdiv(_round_up(B, 8), TB) < 2:
        TB = max(8, _round_up(pl.cdiv(B, 2), 8))
    nt = pl.cdiv(B, TB)
    B_pad = nt * TB

    if B_pad != B:
        # Padding rows gather (valid) row 0 and are sliced off afterwards.
        uidx = jnp.pad(uidx, (0, B_pad - B))
        iidx = jnp.pad(iidx, (0, B_pad - B))

    grid_spec = pltpu.PrefetchScalarGridSpec(
        num_scalar_prefetch=2,                       # user_idx, item_idx -> SMEM
        grid=(nt,),
        in_specs=[pl.BlockSpec(memory_space=pl.ANY),   # user table stays in HBM
                  pl.BlockSpec(memory_space=pl.ANY)],  # item table stays in HBM
        out_specs=pl.BlockSpec((TB, 1), lambda t, uref, iref: (t, 0)),
        scratch_shapes=[
            pltpu.VMEM((TB, D), user_emb.dtype),
            pltpu.VMEM((TB, D), item_emb.dtype),
            pltpu.SemaphoreType.DMA((2,)),
        ],
    )

    cost = pl.CostEstimate(
        flops=2 * B_pad * D,
        transcendentals=0,
        bytes_accessed=2 * B_pad * D * itemsize + 2 * B_pad * 4 + B_pad * itemsize,
    )

    out = pl.pallas_call(
        _bpr_kernel,
        out_shape=jax.ShapeDtypeStruct((B_pad, 1), out_dtype),
        grid_spec=grid_spec,
        compiler_params=pltpu.CompilerParams(
            dimension_semantics=("parallel",),
            vmem_limit_bytes=32 * 1024 * 1024),
        cost_estimate=cost,
    )(uidx, iidx, user_emb, item_emb)

    return out[:B, 0]


if __name__ == "__main__":
    key = jax.random.PRNGKey(0)

    def run_case(num_users, num_items, embedding_dim, batch, case_key, tile_b=256):
        k_u, k_i, k_ui, k_ii = jax.random.split(case_key, 4)
        # nn.init.normal_(..., std=0.01)
        user_emb = (0.01 * jax.random.normal(k_u, (num_users, embedding_dim))
                    ).astype(jnp.float32)
        item_emb = (0.01 * jax.random.normal(k_i, (num_items, embedding_dim))
                    ).astype(jnp.float32)
        user_idx = jax.random.randint(k_ui, (batch,), 0, num_users, dtype=jnp.int32)
        item_idx = jax.random.randint(k_ii, (batch,), 0, num_items, dtype=jnp.int32)

        pred = bpr_forward(user_idx, item_idx, user_emb, item_emb, tile_b=tile_b)
        pred = jax.block_until_ready(pred)

        ref = jnp.sum(jnp.take(user_emb, user_idx, axis=0)
                      * jnp.take(item_emb, item_idx, axis=0), axis=1)
        np.testing.assert_allclose(np.asarray(pred), np.asarray(ref),
                                   rtol=1e-5, atol=1e-6)

    k1, k2 = jax.random.split(key)
    # Small case at the module's scale (single tile).
    run_case(32, 64, 32, 8, k1)
    # Multi-tile case: exercises batch padding, multi-step grid, parallel axis.
    run_case(1000, 500, 64, 300, k2, tile_b=128)

    print("KERNEL_OK")
</pallas_src>

<mosaic_0001>
module attributes {stable_mosaic.version = 11 : i64} {
  func.func @_bpr_kernel(%arg0: i32, %arg1: memref<8xi32, #tpu.memory_space<smem>>, %arg2: memref<8xi32, #tpu.memory_space<smem>>, %arg3: memref<32x32xf32, #tpu.memory_space<any>>, %arg4: memref<64x32xf32, #tpu.memory_space<any>>, %arg5: memref<8x1xf32, #tpu.memory_space<vmem>>, %arg6: memref<8x32xf32, #tpu.memory_space<vmem>>, %arg7: memref<8x32xf32, #tpu.memory_space<vmem>>, %arg8: memref<2x!tpu.dma_semaphore, #tpu.memory_space<semaphore_mem>>) attributes {dimension_semantics = [#tpu.dimension_semantics<parallel>], iteration_bounds = array<i64: 1>, scalar_prefetch = 2 : i64, scratch_operands = 3 : i64, tpu.core_type = #tpu.core_type<tc>, window_params = [{}, {}, {transform_indices = @transform_2, window_bounds = array<i64: 8, 1>}]} {
    %c8_i32 = arith.constant 8 : i32
    %0 = arith.muli %arg0, %c8_i32 : i32
    %c0_i32 = arith.constant 0 : i32
    %c8_i32_0 = arith.constant 8 : i32
    %1 = arith.addi %c0_i32, %c8_i32_0 : i32
    %c1_i32 = arith.constant 1 : i32
    scf.for %arg9 = %c0_i32 to %1 step %c1_i32  : i32 {
      %9 = arith.addi %0, %arg9 : i32
      %10 = arith.index_cast %9 : i32 to index
      %11 = memref.load %arg1[%10] : memref<8xi32, #tpu.memory_space<smem>>
      %12 = arith.addi %0, %arg9 : i32
      %13 = arith.index_cast %12 : i32 to index
      %14 = memref.load %arg2[%13] : memref<8xi32, #tpu.memory_space<smem>>
      %c0_i32_11 = arith.constant 0 : i32
      %c0_i32_12 = arith.constant 0 : i32
      %15 = tpu.memref_slice %arg3[%11, %c0_i32_12] : memref<32x32xf32, #tpu.memory_space<any>> -> memref<1x32xf32, #tpu.memory_space<any>>
      %c0_i32_13 = arith.constant 0 : i32
      %16 = tpu.memref_slice %arg6[%arg9, %c0_i32_13] : memref<8x32xf32, #tpu.memory_space<vmem>> -> memref<1x32xf32, #tpu.memory_space<vmem>>
      %17 = tpu.memref_slice %arg8[%c0_i32_11] : memref<2x!tpu.dma_semaphore, #tpu.memory_space<semaphore_mem>> -> memref<1x!tpu.dma_semaphore, #tpu.memory_space<semaphore_mem>>
      %18 = tpu.memref_squeeze %17 : memref<1x!tpu.dma_semaphore, #tpu.memory_space<semaphore_mem>> -> memref<!tpu.dma_semaphore, #tpu.memory_space<semaphore_mem>>
      tpu.enqueue_dma source(%15 : memref<1x32xf32, #tpu.memory_space<any>>) target(%16 : memref<1x32xf32, #tpu.memory_space<vmem>>) target_semaphore(%18 : memref<!tpu.dma_semaphore, #tpu.memory_space<semaphore_mem>>)
      %c1_i32_14 = arith.constant 1 : i32
      %c0_i32_15 = arith.constant 0 : i32
      %19 = tpu.memref_slice %arg4[%14, %c0_i32_15] : memref<64x32xf32, #tpu.memory_space<any>> -> memref<1x32xf32, #tpu.memory_space<any>>
      %c0_i32_16 = arith.constant 0 : i32
      %20 = tpu.memref_slice %arg7[%arg9, %c0_i32_16] : memref<8x32xf32, #tpu.memory_space<vmem>> -> memref<1x32xf32, #tpu.memory_space<vmem>>
      %21 = tpu.memref_slice %arg8[%c1_i32_14] : memref<2x!tpu.dma_semaphore, #tpu.memory_space<semaphore_mem>> -> memref<1x!tpu.dma_semaphore, #tpu.memory_space<semaphore_mem>>
      %22 = tpu.memref_squeeze %21 : memref<1x!tpu.dma_semaphore, #tpu.memory_space<semaphore_mem>> -> memref<!tpu.dma_semaphore, #tpu.memory_space<semaphore_mem>>
      tpu.enqueue_dma source(%19 : memref<1x32xf32, #tpu.memory_space<any>>) target(%20 : memref<1x32xf32, #tpu.memory_space<vmem>>) target_semaphore(%22 : memref<!tpu.dma_semaphore, #tpu.memory_space<semaphore_mem>>)
    }
    %c8_i32_1 = arith.constant 8 : i32
    %c0_i32_2 = arith.constant 0 : i32
    %c8_i32_3 = arith.constant 8 : i32
    %2 = arith.addi %c0_i32_2, %c8_i32_3 : i32
    %c1_i32_4 = arith.constant 1 : i32
    scf.for %arg9 = %c0_i32_2 to %2 step %c1_i32_4  : i32 {
      %c0_i32_11 = arith.constant 0 : i32
      %c0_i32_12 = arith.constant 0 : i32
      %c0_i32_13 = arith.constant 0 : i32
      %9 = tpu.memref_slice %arg3[%c0_i32_12, %c0_i32_13] : memref<32x32xf32, #tpu.memory_space<any>> -> memref<1x32xf32, #tpu.memory_space<any>>
      %c0_i32_14 = arith.constant 0 : i32
      %10 = tpu.memref_slice %arg6[%arg9, %c0_i32_14] : memref<8x32xf32, #tpu.memory_space<vmem>> -> memref<1x32xf32, #tpu.memory_space<vmem>>
      %11 = tpu.memref_slice %arg8[%c0_i32_11] : memref<2x!tpu.dma_semaphore, #tpu.memory_space<semaphore_mem>> -> memref<1x!tpu.dma_semaphore, #tpu.memory_space<semaphore_mem>>
      %12 = tpu.memref_squeeze %11 : memref<1x!tpu.dma_semaphore, #tpu.memory_space<semaphore_mem>> -> memref<!tpu.dma_semaphore, #tpu.memory_space<semaphore_mem>>
      tpu.wait_dma2 semaphore(%12 : memref<!tpu.dma_semaphore, #tpu.memory_space<semaphore_mem>>) src(%9 : memref<1x32xf32, #tpu.memory_space<any>>) dst(%10 : memref<1x32xf32, #tpu.memory_space<vmem>>)
      %c1_i32_15 = arith.constant 1 : i32
      %c0_i32_16 = arith.constant 0 : i32
      %c0_i32_17 = arith.constant 0 : i32
      %13 = tpu.memref_slice %arg4[%c0_i32_16, %c0_i32_17] : memref<64x32xf32, #tpu.memory_space<any>> -> memref<1x32xf32, #tpu.memory_space<any>>
      %c0_i32_18 = arith.constant 0 : i32
      %14 = tpu.memref_slice %arg7[%arg9, %c0_i32_18] : memref<8x32xf32, #tpu.memory_space<vmem>> -> memref<1x32xf32, #tpu.memory_space<vmem>>
      %15 = tpu.memref_slice %arg8[%c1_i32_15] : memref<2x!tpu.dma_semaphore, #tpu.memory_space<semaphore_mem>> -> memref<1x!tpu.dma_semaphore, #tpu.memory_space<semaphore_mem>>
      %16 = tpu.memref_squeeze %15 : memref<1x!tpu.dma_semaphore, #tpu.memory_space<semaphore_mem>> -> memref<!tpu.dma_semaphore, #tpu.memory_space<semaphore_mem>>
      tpu.wait_dma2 semaphore(%16 : memref<!tpu.dma_semaphore, #tpu.memory_space<semaphore_mem>>) src(%13 : memref<1x32xf32, #tpu.memory_space<any>>) dst(%14 : memref<1x32xf32, #tpu.memory_space<vmem>>)
    }
    %c8_i32_5 = arith.constant 8 : i32
    %c0 = arith.constant 0 : index
    %c0_6 = arith.constant 0 : index
    %3 = vector.load %arg6[%c0, %c0_6] : memref<8x32xf32, #tpu.memory_space<vmem>>, vector<8x32xf32>
    %c0_7 = arith.constant 0 : index
    %c0_8 = arith.constant 0 : index
    %4 = vector.load %arg7[%c0_7, %c0_8] : memref<8x32xf32, #tpu.memory_space<vmem>>, vector<8x32xf32>
    %5 = arith.mulf %3, %4 : vector<8x32xf32>
    %cst = arith.constant dense<0.000000e+00> : vector<8xf32>
    %6 = vector.multi_reduction <add>, %5, %cst [1] : vector<8x32xf32> to vector<8xf32>
    %7 = vector.shape_cast %6 : vector<8xf32> to vector<8x1xf32>
    %c0_9 = arith.constant 0 : index
    %c0_10 = arith.constant 0 : index
    %8 = vector.load %arg5[%c0_9, %c0_10] : memref<8x1xf32, #tpu.memory_space<vmem>>, vector<8x1xf32>
    tpu.vector_store %arg5[%c0_9, %c0_10], %7 {strides = array<i32>} : memref<8x1xf32, #tpu.memory_space<vmem>>, vector<8x1xf32>,
    return
  }
  func.func @transform_2(%arg0: i32, %arg1: memref<8xi32, #tpu.memory_space<smem>>, %arg2: memref<8xi32, #tpu.memory_space<smem>>) -> (i32, i32) {
    %c0_i32 = arith.constant 0 : i32
    %c0_i32_0 = arith.constant 0 : i32
    return %arg0, %c0_i32 : i32, i32
  }
}

</mosaic_0001>

<bundles_post_ra>
// kernel: tpu_custom_call.1
= control target key start
LH: loop header
LB: loop body
LE: loop exit
PB: predicated region body
PF: predicated region fallthrough
CT: control target
= control target key end

     0   :  { %s306_s0 = inlined_call_operand.vmem [shape: s32[8], index: 0, kind: input, shape index: {}]   ;;  %s307_s2 = inlined_call_operand.vmem [shape: f32[32,32], index: 2, kind: input, shape index: {}]   ;;  %s308_s3 = inlined_call_operand.vmem [shape: f32[64,32], index: 3, kind: input, shape index: {}]   ;;  %s309_s4 = inlined_call_operand.vmem [shape: f32[8,1], index: 4, kind: output, shape index: {}]   ;;  %s310_s1 = inlined_call_operand.vmem [shape: s32[8], index: 1, kind: input, shape index: {}]  }
   0x1   :  { %s9_s17 = sshll.u32 %s306_s0, 4  ;;  %s13_s20 = sshll.u32 %s310_s1, 4  ;;  %s10_s17 = int_to_ptr.vmem [resolvable:$true] %s9_s17  ;;  %s14_s20 = int_to_ptr.vmem [resolvable:$true] %s13_s20 }
   0x2   :  { %s218_s21 = scalar_lea.vmem %s10_s17, 16  ;;  %p223_p1 = scmp.lt.s32.totalorder %s10_s17, %s10_s17 }
   0x3   :  { %p219_p0 = scmp.ne.s32.totalorder %s10_s17, %s218_s21  ;;  %p224_p2 = scmp.lt.s32.totalorder %s218_s21, %s218_s21 }
   0x5   :  { %p225_p3 = por %p224_p2, %p223_p1 }
   0x7   :  { %p226_p4 = pnand %p225_p3, %p219_p0 }
   0x9   :  { %229 = shalt.err (!%p226_p4)  }
   0xa   :  { %s264_s22 = smov [#allocation6]   ;;  %s230_s23 = scalar_lea.vmem %s14_s20, 16 }
   0xb   :  { %12 = dma.vmem_to_smem %s10_s17, 16, %s264_s22, [#allocation5] }
   0xc   :  { %p231_p5 = scmp.ne.s32.totalorder %s14_s20, %s230_s23  ;;  %p235_p6 = scmp.lt.s32.totalorder %s14_s20, %s14_s20 }
   0xd   :  { %p236_p7 = scmp.lt.s32.totalorder %s230_s23, %s230_s23 }
   0xf   :  { %p237_p8 = por %p236_p7, %p235_p6 }
  0x11   :  { %p238_p9 = pnand %p237_p8, %p231_p5 }
  0x13   :  { %241 = shalt.err (!%p238_p9)  }
  0x14   :  { %s265_s0 = smov [#allocation7]  }
  0x15   :  { %16 = dma.vmem_to_smem %s14_s20, 16, %s265_s0, [#allocation5] }
  0x16   :  { %250 = dma.done.wait [#allocation5], 32 }
  0x17   :  { %251 = vsyncadd [#allocation5], 4294967264 }
  0x18   :  { %18 = sfence }
  0x19   :  { %s256_s1 = smov 0  }
  0x1a LB: > { %s27_s24 = sld [smem:[#allocation6 + %s258_s1]]  ;;  %s30_s29 = scalar_lea.vmem [#allocation2], %s258_s1  ;;  %s258_s1 = sphi %s256_s1, %s25_s1  }
  0x1b   : > { %s28_s25 = sld [smem:[#allocation7 + %s258_s1]] }
  0x20   : > { %s29_s28 = scalar_lea.vmem %s307_s2, %s27_s24 }
  0x21   : > { %v49_v0 = vld [vmem:[%s29_s28] sm:$0x1] }
  0x22   : > { %50 = vst [vmem:[%s30_s29] sm:$0x1] %v49_v0 }
  0x23   : > { %76 = vsyncadd [#allocation4], 16  ;;  %s77_s6 = scalar_lea.vmem %s308_s3, %s28_s25  ;;  %s78_s7 = scalar_lea.vmem [#allocation3], %s258_s1 }
  0x24   : > { %v98_v1 = vld [vmem:[%s77_s6] sm:$0x1] }
  0x25   : > { %99 = vst [vmem:[%s78_s7] sm:$0x1] %v98_v1 }
  0x26   : > { %125 = vsyncadd [#allocation4 + $0x1], 16  ;;  %s25_s1 = sadd.s32 1, %s258_s1  }
  0x27   : > { %p22_p10 = scmp.ge.s32.totalorder %s25_s1, 8  }
  0x28   :  { %s260_s8 = smov (%p22_p10), 0  }
  0x29   :  { %24 = sbr.rel (!%p22_p10) target bundleno = 26 (0x1a), region = 121 }
  0x2e LB: > { %252 = dma.done.wait [#allocation4], 16  ;;  %s262_s8 = sphi %s260_s8, %s131_s8  }
  0x2f   : > { %253 = vsyncadd [#allocation4], 4294967280 }
  0x30   : > { %254 = dma.done.wait [#allocation4 + $0x1], 16 }
  0x31   : > { %255 = vsyncadd [#allocation4 + $0x1], 4294967280  ;;  %s131_s8 = sadd.s32 1, %s262_s8  }
  0x32   : > { %p128_p11 = scmp.ge.s32.totalorder %s131_s8, 8  }
  0x33   :  { %v138_v2 = vld [vmem:[#allocation2] sm:$0xff] (%p128_p11)  ;;  %v139_v3 = vld [vmem:[#allocation3] sm:$0xff] (%p128_p11)  ;;  %vm141_vm0 = vcmask (%p128_p11), 261120   ;;  %vm145_vm1 = vcmask (%p128_p11), 7168  }
  0x34   :  { %130 = sbr.rel (!%p128_p11) target bundleno = 46 (0x2e), region = 132  ;;  %v140_v4 = vmul.f32 (%p128_p11), %v139_v3, %v138_v2 }
  0x36   :  { %v142_v5 = vsel (%p128_p11), %vm141_vm0, %v140_v4, 0.0 }
  0x37   :  { %143 = vadd.xlane.f32.xlu0 (%p128_p11), %v142_v5 }
  0xc0   :  { %v144_v6 = vpop.xlane.xlu0 %143 }
  0xc1   :  { %146 = vst.msk [vmem:[%s309_s4] sm:$0xff] %vm145_vm1, %v144_v6 }
  0xc2   :  { %151 = vsyncmov [#allocation4] }
  0xc5   :  { %s152_s9 = vpop.sfrf %151 }
  0xc6   :  { %p198_p12 = scmp.ne.s32.totalorder %s152_s9, 0 }
  0xc8   :  { %156 = shalt.err (%p198_p12)  }
  0xc9   :  { %158 = vsyncmov [#allocation4 + $0x1] }
  0xcc   :  { %s159_s10 = vpop.sfrf %158 }
  0xcd   :  { %p199_p13 = scmp.ne.s32.totalorder %s159_s10, 0 }
  0xcf   :  { %163 = shalt.err (%p199_p13)  }

</bundles_post_ra>
